<compile_context>
chip_gen: v6e
topology: v6e:2x2x1
jax: 0.10.0
libtpu: 0.0.40
codegen_flags: <defaults>
</compile_context>

<pallas_src>
import functools

import jax
import jax.numpy as jnp
from jax.experimental import pallas as pl
from jax.experimental.pallas import tpu as pltpu

BN_EPS = 1e-5
LANE = 128


def _bn_relu_folded(h, gb):
    """Training-mode BatchNorm1d (biased variance) folded into scale/shift, + ReLU.

    h : (B, H) f32 pre-activation
    gb: (2, H) f32, row 0 = gamma, row 1 = beta
    """
    gamma = gb[0:1, :]
    beta = gb[1:2, :]
    mean = jnp.mean(h, axis=0, keepdims=True)
    d = h - mean
    var = jnp.mean(d * d, axis=0, keepdims=True)          # two-pass: no cancellation
    scale = gamma * jax.lax.rsqrt(var + BN_EPS)            # (1, H) -- cheap, EUP rsqrt
    return jnp.maximum(d * scale + beta, 0.0)              # 2 full-tile VPU ops


def classifier_kernel(x_ref, w1_ref, gb1_ref, w2_ref, gb2_ref, w3_ref, b3_ref,
                      o_ref):
    # --- block 1: Linear (bias dropped, cancelled by BN) -> BN -> ReLU ------
    # x arrives f32; cast to bf16 at the MXU boundary (hidden on the VPU).
    h = jnp.dot(x_ref[...].astype(jnp.bfloat16), w1_ref[...],
                preferred_element_type=jnp.float32)
    h = _bn_relu_folded(h, gb1_ref[...])

    # --- block 2 ------------------------------------------------------------
    h = jnp.dot(h.astype(jnp.bfloat16), w2_ref[...],
                preferred_element_type=jnp.float32)
    h = _bn_relu_folded(h, gb2_ref[...])

    # --- head: Linear(H2 -> outnum), lane-padded to 128 output columns ------
    out = jnp.dot(h.astype(jnp.bfloat16), w3_ref[...],
                  preferred_element_type=jnp.float32) + b3_ref[...]
    o_ref[...] = out.astype(o_ref.dtype)


def prepare_params(params):
    """One-time (load-time) layout/dtype plumbing, OUT of the jitted hot path.

    params: w1,b1,g1,be1,w2,b2,g2,be2,w3,b3; linear weights stored (in, out).
    b1/b2 are intentionally unused: a bias added immediately before a
    training-mode BatchNorm is exactly cancelled by the batch-mean subtraction.
    Returns (operands_tuple, outnum).
    """
    outnum = params["w3"].shape[1]
    padded = LANE * pl.cdiv(outnum, LANE)                  # lane-dense head width

    w1 = params["w1"].astype(jnp.bfloat16)
    w2 = params["w2"].astype(jnp.bfloat16)
    w3 = jnp.zeros((params["w3"].shape[0], padded), jnp.bfloat16)
    w3 = w3.at[:, :outnum].set(params["w3"].astype(jnp.bfloat16))
    b3 = jnp.zeros((1, padded), jnp.float32).at[:, :outnum].set(params["b3"])
    gb1 = jnp.concatenate([params["g1"], params["be1"]], axis=0)   # (2, H1)
    gb2 = jnp.concatenate([params["g2"], params["be2"]], axis=0)   # (2, H2)

    prepped = (w1, gb1, w2, gb2, w3, b3)
    prepped = jax.tree_util.tree_map(jax.block_until_ready, prepped)
    return prepped, outnum


@functools.partial(jax.jit, static_argnames=("outnum",))
def classifier_forward(x, prepped, outnum):
    """Jitted hot path: a single pallas_call (params already prepped)."""
    w1, gb1, w2, gb2, w3, b3 = prepped
    B, F = x.shape
    H1 = w1.shape[1]
    H2 = w2.shape[1]
    P = w3.shape[1]                                        # padded head width

    operands = (x, w1, gb1, w2, gb2, w3, b3)
    vmem_spec = pl.BlockSpec(memory_space=pltpu.VMEM)

    flops = 2 * B * (F * H1 + H1 * H2 + H2 * P) + 10 * B * (H1 + H2)
    bytes_accessed = (B * F * 4 + F * H1 * 2 + 2 * H1 * 4 + H1 * H2 * 2
                      + 2 * H2 * 4 + H2 * P * 2 + P * 4 + B * P * 4)
    cost = pl.CostEstimate(flops=flops,
                           transcendentals=H1 + H2,        # per-feature rsqrt
                           bytes_accessed=bytes_accessed)

    out = pl.pallas_call(
        classifier_kernel,
        out_shape=jax.ShapeDtypeStruct((B, P), jnp.float32),
        in_specs=[vmem_spec] * len(operands),
        out_specs=vmem_spec,
        cost_estimate=cost,
    )(*operands)
    return out[:, :outnum]


def init_params(key, feature_size, sizes, outnum):
    """PyTorch-default-style init (uniform +/- 1/sqrt(fan_in)); weights (in, out)."""
    params = {}
    dims = [feature_size] + list(sizes)
    keys = jax.random.split(key, 2 * (len(sizes) + 1))
    ki = 0
    for li in range(len(sizes)):
        fan_in, fan_out = dims[li], dims[li + 1]
        bound = 1.0 / jnp.sqrt(float(fan_in))
        params[f"w{li + 1}"] = jax.random.uniform(
            keys[ki], (fan_in, fan_out), jnp.float32, -bound, bound); ki += 1
        params[f"b{li + 1}"] = jax.random.uniform(
            keys[ki], (1, fan_out), jnp.float32, -bound, bound); ki += 1
        params[f"g{li + 1}"] = jnp.ones((1, fan_out), jnp.float32)    # BN gamma
        params[f"be{li + 1}"] = jnp.zeros((1, fan_out), jnp.float32)  # BN beta
    fan_in = dims[-1]
    bound = 1.0 / jnp.sqrt(float(fan_in))
    n = len(sizes) + 1
    params[f"w{n}"] = jax.random.uniform(
        keys[ki], (fan_in, outnum), jnp.float32, -bound, bound); ki += 1
    params[f"b{n}"] = jax.random.uniform(
        keys[ki], (1, outnum), jnp.float32, -bound, bound); ki += 1
    return params


def reference_forward(x, params):
    """Pure-JAX reference of the module forward (biases included, bf16 matmuls
    with f32 accumulation to mirror the kernel's MXU path)."""
    def bn(h, g, be):
        mean = jnp.mean(h, axis=0, keepdims=True)
        var = jnp.mean((h - mean) ** 2, axis=0, keepdims=True)
        return (h - mean) * jax.lax.rsqrt(var + BN_EPS) * g + be

    h = jnp.dot(x.astype(jnp.bfloat16), params["w1"].astype(jnp.bfloat16),
                preferred_element_type=jnp.float32) + params["b1"]
    h = jnp.maximum(bn(h, params["g1"], params["be1"]), 0.0)
    h = jnp.dot(h.astype(jnp.bfloat16), params["w2"].astype(jnp.bfloat16),
                preferred_element_type=jnp.float32) + params["b2"]
    h = jnp.maximum(bn(h, params["g2"], params["be2"]), 0.0)
    return jnp.dot(h.astype(jnp.bfloat16), params["w3"].astype(jnp.bfloat16),
                   preferred_element_type=jnp.float32) + params["b3"]


if __name__ == "__main__":
    # Small shapes consistent with the module: feature_size=128, size=[128,128],
    # class_num=2 -> outnum=1, batch=8.  (For real throughput, batch many more
    # rows per call -- each matmul costs one MXU pass regardless of B<=128.)
    B, F = 8, 128
    SIZES = [128, 128]
    OUTNUM = 1  # class_num = 2  =>  outnum = 1

    key = jax.random.PRNGKey(0)
    kx, kp = jax.random.split(key)
    x = jax.random.normal(kx, (B, F), jnp.float32)
    params = init_params(kp, F, SIZES, OUTNUM)

    # One-time parameter prep (outside the jitted hot path).
    prepped, outnum = prepare_params(params)

    out = classifier_forward(x, prepped, outnum)
    out = jax.block_until_ready(out)

    ref = reference_forward(x, params)
    assert out.shape == (B, OUTNUM), out.shape
    assert jnp.allclose(out, ref, atol=1e-3, rtol=1e-3), "mismatch vs reference"

    print("KERNEL_OK")
</pallas_src>

<mosaic_0001>
module attributes {stable_mosaic.version = 11 : i64} {
  func.func @classifier_kernel(%arg0: memref<8x128xf32, #tpu.memory_space<vmem>>, %arg1: memref<128x128xbf16, #tpu.memory_space<vmem>>, %arg2: memref<2x128xf32, #tpu.memory_space<vmem>>, %arg3: memref<128x128xbf16, #tpu.memory_space<vmem>>, %arg4: memref<2x128xf32, #tpu.memory_space<vmem>>, %arg5: memref<128x128xbf16, #tpu.memory_space<vmem>>, %arg6: memref<1x128xf32, #tpu.memory_space<vmem>>, %arg7: memref<8x128xf32, #tpu.memory_space<vmem>>) attributes {dimension_semantics = [], scalar_prefetch = 0 : i64, scratch_operands = 0 : i64, tpu.core_type = #tpu.core_type<tc>} {
    %c0 = arith.constant 0 : index
    %c0_0 = arith.constant 0 : index
    %0 = vector.load %arg0[%c0, %c0_0] : memref<8x128xf32, #tpu.memory_space<vmem>>, vector<8x128xf32>
    %1 = arith.truncf %0 : vector<8x128xf32> to vector<8x128xbf16>
    %c0_1 = arith.constant 0 : index
    %c0_2 = arith.constant 0 : index
    %2 = vector.load %arg1[%c0_1, %c0_2] : memref<128x128xbf16, #tpu.memory_space<vmem>>, vector<128x128xbf16>
    %cst = arith.constant dense<0.000000e+00> : vector<8x128xf32>
    %3 = tpu.matmul %1, %2, %cst {dimension_numbers = #tpu.dot_dimension_numbers<[1], [0], [0], [1], [0, 0, 1, 1], [], []>} : vector<8x128xbf16>, vector<128x128xbf16>, vector<8x128xf32> -> vector<8x128xf32>
    %c0_3 = arith.constant 0 : index
    %c0_4 = arith.constant 0 : index
    %4 = vector.load %arg2[%c0_3, %c0_4] : memref<2x128xf32, #tpu.memory_space<vmem>>, vector<2x128xf32>
    %5 = vector.extract_strided_slice %4 {offsets = [0, 0], sizes = [1, 128], strides = [1, 1]} : vector<2x128xf32> to vector<1x128xf32>
    %6 = vector.extract_strided_slice %4 {offsets = [1, 0], sizes = [1, 128], strides = [1, 1]} : vector<2x128xf32> to vector<1x128xf32>
    %cst_5 = arith.constant dense<0.000000e+00> : vector<128xf32>
    %7 = vector.multi_reduction <add>, %3, %cst_5 [0] : vector<8x128xf32> to vector<128xf32>
    %8 = vector.shape_cast %7 : vector<128xf32> to vector<1x128xf32>
    %cst_6 = arith.constant 8.000000e+00 : f32
    %9 = vector.broadcast %cst_6 : f32 to vector<1x128xf32>
    %10 = arith.divf %8, %9 : vector<1x128xf32>
    %11 = vector.broadcast %10 : vector<1x128xf32> to vector<8x128xf32>
    %12 = arith.subf %3, %11 : vector<8x128xf32>
    %13 = arith.mulf %12, %12 : vector<8x128xf32>
    %cst_7 = arith.constant dense<0.000000e+00> : vector<128xf32>
    %14 = vector.multi_reduction <add>, %13, %cst_7 [0] : vector<8x128xf32> to vector<128xf32>
    %15 = vector.shape_cast %14 : vector<128xf32> to vector<1x128xf32>
    %cst_8 = arith.constant 8.000000e+00 : f32
    %16 = vector.broadcast %cst_8 : f32 to vector<1x128xf32>
    %17 = arith.divf %15, %16 : vector<1x128xf32>
    %cst_9 = arith.constant 9.99999974E-6 : f32
    %18 = vector.broadcast %cst_9 : f32 to vector<1x128xf32>
    %19 = arith.addf %17, %18 : vector<1x128xf32>
    %20 = math.rsqrt %19 : vector<1x128xf32>
    %21 = arith.mulf %5, %20 : vector<1x128xf32>
    %22 = vector.broadcast %21 : vector<1x128xf32> to vector<8x128xf32>
    %23 = arith.mulf %12, %22 : vector<8x128xf32>
    %24 = vector.broadcast %6 : vector<1x128xf32> to vector<8x128xf32>
    %25 = arith.addf %23, %24 : vector<8x128xf32>
    %cst_10 = arith.constant 0.000000e+00 : f32
    %26 = vector.broadcast %cst_10 : f32 to vector<8x128xf32>
    %27 = arith.maximumf %25, %26 : vector<8x128xf32>
    %28 = arith.truncf %27 : vector<8x128xf32> to vector<8x128xbf16>
    %c0_11 = arith.constant 0 : index
    %c0_12 = arith.constant 0 : index
    %29 = vector.load %arg3[%c0_11, %c0_12] : memref<128x128xbf16, #tpu.memory_space<vmem>>, vector<128x128xbf16>
    %cst_13 = arith.constant dense<0.000000e+00> : vector<8x128xf32>
    %30 = tpu.matmul %28, %29, %cst_13 {dimension_numbers = #tpu.dot_dimension_numbers<[1], [0], [0], [1], [0, 0, 1, 1], [], []>} : vector<8x128xbf16>, vector<128x128xbf16>, vector<8x128xf32> -> vector<8x128xf32>
    %c0_14 = arith.constant 0 : index
    %c0_15 = arith.constant 0 : index
    %31 = vector.load %arg4[%c0_14, %c0_15] : memref<2x128xf32, #tpu.memory_space<vmem>>, vector<2x128xf32>
    %32 = vector.extract_strided_slice %31 {offsets = [0, 0], sizes = [1, 128], strides = [1, 1]} : vector<2x128xf32> to vector<1x128xf32>
    %33 = vector.extract_strided_slice %31 {offsets = [1, 0], sizes = [1, 128], strides = [1, 1]} : vector<2x128xf32> to vector<1x128xf32>
    %cst_16 = arith.constant dense<0.000000e+00> : vector<128xf32>
    %34 = vector.multi_reduction <add>, %30, %cst_16 [0] : vector<8x128xf32> to vector<128xf32>
    %35 = vector.shape_cast %34 : vector<128xf32> to vector<1x128xf32>
    %cst_17 = arith.constant 8.000000e+00 : f32
    %36 = vector.broadcast %cst_17 : f32 to vector<1x128xf32>
    %37 = arith.divf %35, %36 : vector<1x128xf32>
    %38 = vector.broadcast %37 : vector<1x128xf32> to vector<8x128xf32>
    %39 = arith.subf %30, %38 : vector<8x128xf32>
    %40 = arith.mulf %39, %39 : vector<8x128xf32>
    %cst_18 = arith.constant dense<0.000000e+00> : vector<128xf32>
    %41 = vector.multi_reduction <add>, %40, %cst_18 [0] : vector<8x128xf32> to vector<128xf32>
    %42 = vector.shape_cast %41 : vector<128xf32> to vector<1x128xf32>
    %cst_19 = arith.constant 8.000000e+00 : f32
    %43 = vector.broadcast %cst_19 : f32 to vector<1x128xf32>
    %44 = arith.divf %42, %43 : vector<1x128xf32>
    %cst_20 = arith.constant 9.99999974E-6 : f32
    %45 = vector.broadcast %cst_20 : f32 to vector<1x128xf32>
    %46 = arith.addf %44, %45 : vector<1x128xf32>
    %47 = math.rsqrt %46 : vector<1x128xf32>
    %48 = arith.mulf %32, %47 : vector<1x128xf32>
    %49 = vector.broadcast %48 : vector<1x128xf32> to vector<8x128xf32>
    %50 = arith.mulf %39, %49 : vector<8x128xf32>
    %51 = vector.broadcast %33 : vector<1x128xf32> to vector<8x128xf32>
    %52 = arith.addf %50, %51 : vector<8x128xf32>
    %cst_21 = arith.constant 0.000000e+00 : f32
    %53 = vector.broadcast %cst_21 : f32 to vector<8x128xf32>
    %54 = arith.maximumf %52, %53 : vector<8x128xf32>
    %55 = arith.truncf %54 : vector<8x128xf32> to vector<8x128xbf16>
    %c0_22 = arith.constant 0 : index
    %c0_23 = arith.constant 0 : index
    %56 = vector.load %arg5[%c0_22, %c0_23] : memref<128x128xbf16, #tpu.memory_space<vmem>>, vector<128x128xbf16>
    %cst_24 = arith.constant dense<0.000000e+00> : vector<8x128xf32>
    %57 = tpu.matmul %55, %56, %cst_24 {dimension_numbers = #tpu.dot_dimension_numbers<[1], [0], [0], [1], [0, 0, 1, 1], [], []>} : vector<8x128xbf16>, vector<128x128xbf16>, vector<8x128xf32> -> vector<8x128xf32>
    %c0_25 = arith.constant 0 : index
    %c0_26 = arith.constant 0 : index
    %58 = vector.load %arg6[%c0_25, %c0_26] : memref<1x128xf32, #tpu.memory_space<vmem>>, vector<1x128xf32>
    %59 = vector.broadcast %58 : vector<1x128xf32> to vector<8x128xf32>
    %60 = arith.addf %57, %59 : vector<8x128xf32>
    %c0_27 = arith.constant 0 : index
    %c0_28 = arith.constant 0 : index
    %61 = vector.load %arg7[%c0_27, %c0_28] : memref<8x128xf32, #tpu.memory_space<vmem>>, vector<8x128xf32>
    tpu.vector_store %arg7[%c0_27, %c0_28], %60 {strides = array<i32>} : memref<8x128xf32, #tpu.memory_space<vmem>>, vector<8x128xf32>,
    return
  }
}

</mosaic_0001>

<bundles_post_ra>
// kernel: classifier_forward.1
= control target key start
LH: loop header
LB: loop body
LE: loop exit
PB: predicated region body
PF: predicated region fallthrough
CT: control target
= control target key end

     0   :  { %12 = vsyncpa [#allocation3], 0  ;;  %s823_s0 = inlined_call_operand.hbm [shape: f32[8,128], index: 0, kind: input, shape index: {}]   ;;  %s824_s1 = inlined_call_operand.hbm [shape: bf16[128,128], index: 1, kind: input, shape index: {}]   ;;  %s825_s2 = inlined_call_operand.vmem [shape: f32[2,128], index: 2, kind: input, shape index: {}]   ;;  %s826_s3 = inlined_call_operand.hbm [shape: bf16[128,128], index: 3, kind: input, shape index: {}]   ;;  %s827_s4 = inlined_call_operand.vmem [shape: f32[2,128], index: 4, kind: input, shape index: {}]   ;;  %s828_s5 = inlined_call_operand.hbm [shape: bf16[128,128], index: 5, kind: input, shape index: {}]   ;;  %s829_s6 = inlined_call_operand.vmem [shape: f32[1,128], index: 6, kind: input, shape index: {}]   ;;  %s830_s7 = inlined_call_operand.vmem [shape: f32[8,128], index: 7, kind: output, shape index: {}]  }
   0x1   :  { %13 = vsyncpa [#allocation5], 0 }
   0x2   :  { %14 = vsyncpa [#allocation8], 0  ;;  %s708_s24 = smov [#allocation4]  }
   0x3   :  { %s30_s25 = sshll.u32 %s708_s24, 4  ;;  %s31_s25 = int_to_ptr.vmem [resolvable:$true] %s30_s25 }
   0x4   :  { %s630_s26 = scalar_lea.vmem %s31_s25, 1024  ;;  %p635_p1 = scmp.lt.s32.totalorder %s31_s25, %s31_s25 }
   0x5   :  { %p631_p0 = scmp.ne.s32.totalorder %s31_s25, %s630_s26  ;;  %p636_p2 = scmp.lt.s32.totalorder %s630_s26, %s630_s26 }
   0x7   :  { %p637_p3 = por %p636_p2, %p635_p1 }
   0x9   :  { %p638_p4 = pnand %p637_p3, %p631_p0 }
   0xb   :  { %641 = shalt.err (!%p638_p4)
}
   0xc   :  { %s709_s27 = smov 64   ;;  %s710_s28 = smov 4  }
   0xd   :  { %36 = dma.hbm_to_vmem [thread:$0]  %s824_s1, 1024, %s31_s25, [#allocation5], %s709_s27, %s709_s27, %s710_s28  }
   0xe   :  { %s711_s8 = smov [#allocation2]   ;;  %s712_s10 = smov [#allocation6]  }
   0xf   :  { %s21_s9 = sshll.u32 %s711_s8, 4  ;;  %s44_s11 = sshll.u32 %s712_s10, 4  ;;  %s22_s9 = int_to_ptr.vmem [resolvable:$true] %s21_s9  ;;  %s45_s11 = int_to_ptr.vmem [resolvable:$true] %s44_s11 }
  0x10   :  { %s650_s12 = scalar_lea.vmem %s22_s9, 128  ;;  %p655_p6 = scmp.lt.s32.totalorder %s22_s9, %s22_s9 }
  0x11   :  { %p651_p5 = scmp.ne.s32.totalorder %s22_s9, %s650_s12  ;;  %p656_p7 = scmp.lt.s32.totalorder %s650_s12, %s650_s12 }
  0x13   :  { %p657_p8 = por %p656_p7, %p655_p6 }
  0x15   :  { %p658_p9 = pnand %p657_p8, %p651_p5 }
  0x17   :  { %661 = shalt.err (!%p658_p9)
}
  0x18   :  { %24 = dma.hbm_to_vmem [thread:$0]  %s823_s0, 128, %s22_s9, [#allocation3]  }
  0x19   :  { %s670_s15 = scalar_lea.vmem %s45_s11, 1024  ;;  %p675_p11 = scmp.lt.s32.totalorder %s45_s11, %s45_s11 }
  0x1a   :  { %p671_p10 = scmp.ne.s32.totalorder %s45_s11, %s670_s15  ;;  %p676_p12 = scmp.lt.s32.totalorder %s670_s15, %s670_s15 }
  0x1c   :  { %p677_p13 = por %p676_p12, %p675_p11 }
  0x1e   :  { %p678_p0 = pnand %p677_p13, %p671_p10 }
  0x20   :  { %681 = shalt.err (!%p678_p0)
}
  0x21   :  { %50 = dma.hbm_to_vmem [thread:$0]  %s826_s3, 1024, %s45_s11, [#allocation5], %s709_s27, %s709_s27, %s710_s28  }
  0x22   :  { %s713_s17 = smov [#allocation7]  }
  0x23   :  { %s58_s18 = sshll.u32 %s713_s17, 4  ;;  %s59_s18 = int_to_ptr.vmem [resolvable:$true] %s58_s18 }
  0x24   :  { %s690_s19 = scalar_lea.vmem %s59_s18, 1024  ;;  %p695_p2 = scmp.lt.s32.totalorder %s59_s18, %s59_s18 }
  0x25   :  { %p691_p1 = scmp.ne.s32.totalorder %s59_s18, %s690_s19  ;;  %p696_p3 = scmp.lt.s32.totalorder %s690_s19, %s690_s19 }
  0x27   :  { %p697_p4 = por %p696_p3, %p695_p2 }
  0x29   :  { %p698_p5 = pnand %p697_p4, %p691_p1 }
  0x2b   :  { %701 = shalt.err (!%p698_p5)
}
  0x2c   :  { %64 = dma.hbm_to_vmem [thread:$0]  %s828_s5, 1024, %s59_s18, [#allocation8], %s709_s27, %s709_s27, %s710_s28  }
  0x2d   :  { %702 = dma.done.wait [#allocation3], 128  }
  0x2e   :  { %703 = vsyncadd [#allocation3], 4294967168 }
  0x2f   :  { %704 = dma.done.wait [#allocation5], 2048  }
  0x30   :  { %705 = vsyncadd [#allocation5], 4294965248 }
  0x31   :  { %706 = dma.done.wait [#allocation8], 1024  }
  0x32   :  { %707 = vsyncadd [#allocation8], 4294966272  ;;  %v714_v0 = vmov 0.0   ;;  %vm715_vm0 = vmmov 0   ;;  %v594_v1 = vld [vmem:[#allocation4 + $0x38] sm:$0xff]   ;;  %v595_v2 = vld [vmem:[#allocation4 + $0x30] sm:$0xff]   ;;  %v207_v40 = vlaneseq }
  0x33   :  { %526 = vmatprep.subr.bf16.mxu0 %v714_v0  ;;  %542 = vmatprep.mubr.msk.bf16.mxu0 %vm715_vm0, %v714_v0  ;;  %v596_v3 = vld [vmem:[#allocation4 + $0x28] sm:$0xff]   ;;  %v597_v4 = vld [vmem:[#allocation4 + $0x20] sm:$0xff]   ;;  %v598_v5 = vld [vmem:[#allocation4 + $0x18] sm:$0xff]  }
  0x34   :  { %546 = vmatprep.subr.bf16.mxu1 %v714_v0  ;;  %562 = vmatprep.mubr.msk.bf16.mxu1 %vm715_vm0, %v714_v0  ;;  %v599_v6 = vld [vmem:[#allocation4 + $0x10] sm:$0xff]   ;;  %v600_v7 = vld [vmem:[#allocation4 + $0x8] sm:$0xff]   ;;  %v601_v8 = vld [vmem:[#allocation4] sm:$0xff]   ;;  %v800_v41 = vshrl.u32 %v207_v40, 7 }
  0x35   :  { %527 = vmatpush3.bf16.msra.mxu0 %v594_v1  ;;  %v80_v9 = vld [vmem:[#allocation2] sm:$0xff]  ;;  %v603_v12 = vld [vmem:[#allocation6 + $0x30] sm:$0xff]   ;;  %v604_v13 = vld [vmem:[#allocation6 + $0x28] sm:$0xff]  }
  0x36   :  { %528 = vmatprep.subr.bf16.mxu0 %v714_v0  ;;  %v81_v10 = vpack.c.bf16 %v80_v9, %v80_v9  ;;  %v602_v11 = vld [vmem:[#allocation6 + $0x38] sm:$0xff]   ;;  %v605_v14 = vld [vmem:[#allocation6 + $0x20] sm:$0xff]   ;;  %v607_v16 = vld [vmem:[#allocation6 + $0x10] sm:$0xff]   ;;  %v209_v43 = vsub.s32 0, %v800_v41  ;;  %v214_v44 = vsub.s32 1, %v800_v41 }
  0x37   :  { %547 = vmatpush3.bf16.msra.mxu1 %v602_v11  ;;  %v606_v15 = vld [vmem:[#allocation6 + $0x18] sm:$0xff]   ;;  %v608_v17 = vld [vmem:[#allocation6 + $0x8] sm:$0xff]   ;;  %v609_v18 = vld [vmem:[#allocation6] sm:$0xff]  }
  0x38   :  { %548 = vmatprep.subr.bf16.mxu1 %v714_v0  ;;  %v186_v42 = vld [vmem:[%s825_s2] sm:$0x3]  ;;  %v611_v54 = vld [vmem:[#allocation7 + $0x30] sm:$0xff]   ;;  %v612_v55 = vld [vmem:[#allocation7 + $0x28] sm:$0xff]  }
  0x39   :  { %529 = vmatpush3.bf16.msra.mxu0 %v595_v2  ;;  %v215_v48 = vrot.slane %v186_v42, %v214_v44  ;;  %v610_v53 = vld [vmem:[#allocation7 + $0x38] sm:$0xff]   ;;  %v613_v56 = vld [vmem:[#allocation7 + $0x20] sm:$0xff]   ;;  %v615_v58 = vld [vmem:[#allocation7 + $0x10] sm:$0xff]  }
  0x3a   :  { %530 = vmatprep.subr.bf16.mxu0 %v714_v0  ;;  %v614_v57 = vld [vmem:[#allocation7 + $0x18] sm:$0xff]   ;;  %v616_v59 = vld [vmem:[#allocation7 + $0x8] sm:$0xff]   ;;  %v617_v60 = vld [vmem:[#allocation7] sm:$0xff]  }
  0x3b   :  { %549 = vmatpush3.bf16.msra.mxu1 %v603_v12 }
  0x3c   :  { %550 = vmatprep.subr.bf16.mxu1 %v714_v0 }
  0x3d   :  { %531 = vmatpush3.bf16.msra.mxu0 %v596_v3 }
  0x3e   :  { %532 = vmatprep.subr.bf16.mxu0 %v714_v0 }
  0x3f   :  { %551 = vmatpush3.bf16.msra.mxu1 %v604_v13 }
  0x40   :  { %552 = vmatprep.subr.bf16.mxu1 %v714_v0 }
  0x41   :  { %533 = vmatpush3.bf16.msra.mxu0 %v597_v4 }
  0x42   :  { %534 = vmatprep.subr.bf16.mxu0 %v714_v0 }
  0x43   :  { %553 = vmatpush3.bf16.msra.mxu1 %v605_v14 }
  0x44   :  { %554 = vmatprep.subr.bf16.mxu1 %v714_v0 }
  0x45   :  { %535 = vmatpush3.bf16.msra.mxu0 %v598_v5 }
  0x46   :  { %536 = vmatprep.subr.bf16.mxu0 %v714_v0 }
  0x47   :  { %555 = vmatpush3.bf16.msra.mxu1 %v606_v15 }
  0x48   :  { %556 = vmatprep.subr.bf16.mxu1 %v714_v0 }
  0x49   :  { %537 = vmatpush3.bf16.msra.mxu0 %v599_v6 }
  0x4a   :  { %538 = vmatprep.subr.bf16.mxu0 %v714_v0 }
  0x4b   :  { %557 = vmatpush3.bf16.msra.mxu1 %v607_v16 }
  0x4c   :  { %558 = vmatprep.subr.bf16.mxu1 %v714_v0 }
  0x4d   :  { %539 = vmatpush3.bf16.msra.mxu0 %v600_v7 }
  0x4e   :  { %540 = vmatprep.subr.bf16.mxu0 %v714_v0 }
  0x4f   :  { %559 = vmatpush3.bf16.msra.mxu1 %v608_v17 }
  0x50   :  { %560 = vmatprep.subr.bf16.mxu1 %v714_v0 }
  0x51   :  { %541 = vmatpush3.bf16.msra.mxu0 %v601_v8 }
  0x52   :  { %566 = vmatprep.subr.bf16.mxu0 %v714_v0 }
  0x53   :  { %561 = vmatpush3.bf16.msra.mxu1 %v609_v18  ;;  %v323_v18 = vld [vmem:[%s827_s4] sm:$0x3] }
  0x54   :  { %543 = vmatmul.mubr.bf16.vlgmr.msra.gmra.mxu0 %v81_v10 }
  0x55   :  { %582 = vmatprep.mubr.msk.bf16.mxu0 %vm715_vm0, %v714_v0  ;;  %567 = vmatpush3.bf16.msra.mxu0 %v610_v53 }
  0x56   :  { %568 = vmatprep.subr.bf16.mxu0 %v714_v0 }
  0x59   :  { %569 = vmatpush3.bf16.msra.mxu0 %v611_v54 }
  0x5a   :  { %570 = vmatprep.subr.bf16.mxu0 %v714_v0 }
  0x5d   :  { %571 = vmatpush3.bf16.msra.mxu0 %v612_v55 }
  0x5e   :  { %572 = vmatprep.subr.bf16.mxu0 %v714_v0 }
  0x61   :  { %573 = vmatpush3.bf16.msra.mxu0 %v613_v56 }
  0x62   :  { %574 = vmatprep.subr.bf16.mxu0 %v714_v0 }
  0x65   :  { %575 = vmatpush3.bf16.msra.mxu0 %v614_v57 }
  0x66   :  { %576 = vmatprep.subr.bf16.mxu0 %v714_v0 }
  0x69   :  { %577 = vmatpush3.bf16.msra.mxu0 %v615_v58 }
  0x6a   :  { %578 = vmatprep.subr.bf16.mxu0 %v714_v0 }
  0x6d   :  { %579 = vmatpush3.bf16.msra.mxu0 %v616_v59 }
  0x6e   :  { %580 = vmatprep.subr.bf16.mxu0 %v714_v0 }
  0x71   :  { %581 = vmatpush3.bf16.msra.mxu0 %v617_v60 }
 0x114   :  { %v180_v19 = vpop.f32.mrf.mxu0 }
 0x115   :  { %v187_v20 = vrot.slane %v180_v19, 4 }
 0x116   :  { %v544_v21 = vpop.f32.mrf.mxu0 }
 0x117   :  { %v188_v22 = vadd.f32 %v187_v20, %v180_v19 }
 0x118   :  { %v183_v23 = vpop.f32.mrf.mxu0 }
 0x119   :  { %v189_v24 = vrot.slane %v188_v22, 2 }
 0x11a   :  { %v545_v25 = vpop.f32.mrf.mxu0 }
 0x11b   :  { %v190_v26 = vadd.f32 %v189_v24, %v188_v22  ;;  %v351_v22 = vrot.slane %v323_v18, %v214_v44 }
 0x11d   :  { %v191_v27 = vrot.slane %v190_v26, 1 }
 0x11f   :  { %v192_v28 = vadd.f32 %v191_v27, %v190_v26  ;;  %v490_v27 = vld [vmem:[%s829_s6] ss:$0 sm:$0xff] }
 0x121   :  { %v194_v29 = vmul.f32 0.125, %v192_v28 }
 0x123   :  { %v195_v30 = vsub.f32 %v180_v19, %v194_v29 }
 0x125   :  { %v196_v31 = vmul.f32 %v195_v30, %v195_v30 }
 0x127   :  { %v197_v32 = vrot.slane %v196_v31, 4 }
 0x129   :  { %v198_v33 = vadd.f32 %v197_v32, %v196_v31 }
 0x12b   :  { %v199_v34 = vrot.slane %v198_v33, 2 }
 0x12d   :  { %v200_v35 = vadd.f32 %v199_v34, %v198_v33 }
 0x12f   :  { %v201_v36 = vrot.slane %v200_v35, 1 }
 0x131   :  { %v202_v37 = vadd.f32 %v201_v36, %v200_v35 }
 0x133   :  { %v203_v38 = vmul.f32 0.125, %v202_v37 }
 0x135   :  { %v204_v39 = vadd.f32 1e-05, %v203_v38 }
 0x137   :  { %618 = vrsqrt.f32 %v204_v39 }
 0x144   :  { %v619_v45 = vpop.eup %618 }
 0x145   :  { %v206_v46 = vmul.f32 %v619_v45, %v186_v42 }
 0x147   :  { %v210_v47 = vrot.slane %v206_v46, %v209_v43 }
 0x149   :  { %v211_v49 = vmul.f32 %v210_v47, %v195_v30 }
 0x14b   :  { %v216_v50 = vadd.f32 %v215_v48, %v211_v49 }
 0x14d   :  { %v217_v51 = vmax.f32 %v216_v50, 0.0 }
 0x14f   :  { %v218_v52 = vpack.c.bf16 %v217_v51, %v217_v51 }
 0x151   :  { %563 = vmatmul.mubr.bf16.vlgmr.msra.gmra.mxu1 %v218_v52 }
 0x211   :  { %v317_v61 = vpop.f32.mrf.mxu1 }
 0x212   :  { %v324_v62 = vrot.slane %v317_v61, 4 }
 0x213   :  { %v564_v63 = vpop.f32.mrf.mxu1 }
 0x214   :  { %v325_v1 = vadd.f32 %v324_v62, %v317_v61 }
 0x215   :  { %v320_v2 = vpop.f32.mrf.mxu1 }
 0x216   :  { %v326_v3 = vrot.slane %v325_v1, 2 }
 0x217   :  { %v565_v4 = vpop.f32.mrf.mxu1 }
 0x218   :  { %v327_v5 = vadd.f32 %v326_v3, %v325_v1 }
 0x21a   :  { %v328_v6 = vrot.slane %v327_v5, 1 }
 0x21c   :  { %v329_v7 = vadd.f32 %v328_v6, %v327_v5 }
 0x21e   :  { %v330_v8 = vmul.f32 0.125, %v329_v7 }
 0x220   :  { %v331_v9 = vsub.f32 %v317_v61, %v330_v8 }
 0x222   :  { %v332_v10 = vmul.f32 %v331_v9, %v331_v9 }
 0x224   :  { %v333_v11 = vrot.slane %v332_v10, 4 }
 0x226   :  { %v334_v12 = vadd.f32 %v333_v11, %v332_v10 }
 0x228   :  { %v335_v13 = vrot.slane %v334_v12, 2 }
 0x22a   :  { %v336_v14 = vadd.f32 %v335_v13, %v334_v12 }
 0x22c   :  { %v337_v0 = vrot.slane %v336_v14, 1 }
 0x22e   :  { %v338_v15 = vadd.f32 %v337_v0, %v336_v14 }
 0x230   :  { %v339_v16 = vmul.f32 0.125, %v338_v15 }
 0x232   :  { %v340_v17 = vadd.f32 1e-05, %v339_v16 }
 0x234   :  { %620 = vrsqrt.f32 %v340_v17 }
 0x241   :  { %v621_v19 = vpop.eup %620 }
 0x242   :  { %v342_v20 = vmul.f32 %v621_v19, %v323_v18 }
 0x244   :  { %v346_v21 = vrot.slane %v342_v20, %v209_v43 }
 0x246   :  { %v347_v23 = vmul.f32 %v346_v21, %v331_v9 }
 0x248   :  { %v352_v24 = vadd.f32 %v351_v22, %v347_v23 }
 0x24a   :  { %v353_v25 = vmax.f32 %v352_v24, 0.0 }
 0x24c   :  { %v354_v26 = vpack.c.bf16 %v353_v25, %v353_v25 }
 0x24e   :  { %583 = vmatmul.mubr.bf16.vlgmr.msra.gmra.mxu0 %v354_v26 }
 0x30e   :  { %v460_v28 = vpop.f32.mrf.mxu0 }
 0x30f   :  { %v461_v29 = vadd.f32 %v490_v27, %v460_v28 }
 0x310   :  { %v584_v30 = vpop.f32.mrf.mxu0 }
 0x311   :  { %466 = vst [vmem:[%s830_s7] sm:$0xff] %v461_v29 }
 0x312   :  { %v463_v31 = vpop.f32.mrf.mxu0 }
 0x314   :  { %v585_v32 = vpop.f32.mrf.mxu0 }
 0x315   :  { %471 = vsyncpa [#allocation3], 1 }
 0x316   :  { %472 = vsyncpa [#allocation5], 1 }
 0x317   :  { %473 = vsyncpa [#allocation8], 1 }

</bundles_post_ra>
